<compile_context>
chip_gen: v7x
topology: tpu7x:2x2x1
jax: 0.10.0
libtpu: 0.0.40
codegen_flags: <defaults>
</compile_context>

<pallas_src>
import re

import jax
import jax.numpy as jnp
from jax.experimental import pallas as pl
from jax.experimental.pallas import tpu as pltpu


# --------------------------------------------------------------------------
# Fused kernel: enc_1 -> enc_2 -> z_layer -> dec_1 -> dec_2 -> x_bar_layer
# --------------------------------------------------------------------------
def ae_kernel(x_ref,
              w1_ref, b1_ref,      # enc_1
              w2_ref, b2_ref,      # enc_2
              wz_ref, bz_ref,      # z_layer
              wd1_ref, bd1_ref,    # dec_1
              wd2_ref, bd2_ref,    # dec_2
              wx_ref, bx_ref,      # x_bar_layer
              xbar_ref, z_ref):
    cd = w1_ref.dtype  # MXU compute dtype (bf16 by default)

    def dense(h, w_ref, b_ref, relu):
        # MXU matmul in the compute dtype with f32 accumulation.
        acc = jnp.dot(h, w_ref[...], preferred_element_type=jnp.float32)
        acc = acc + b_ref[...]                    # bias + ReLU in f32 on the VPU
        return jnp.maximum(acc, 0.0) if relu else acc

    x = x_ref[...]                                # already in compute dtype
    h1 = dense(x,  w1_ref,  b1_ref,  True).astype(cd)           # relu(enc_1(x))
    h2 = dense(h1, w2_ref,  b2_ref,  True).astype(cd)           # relu(enc_2(h1))
    z  = dense(h2, wz_ref,  bz_ref,  False)                     # z_layer(h2), f32
    d1 = dense(z.astype(cd), wd1_ref, bd1_ref, True).astype(cd) # relu(dec_1(z))
    d2 = dense(d1, wd2_ref, bd2_ref, True).astype(cd)           # relu(dec_2(d1))
    xb = dense(d2, wx_ref,  bx_ref,  False)                     # x_bar_layer(d2)

    z_ref[...]    = z.astype(z_ref.dtype)
    xbar_ref[...] = xb.astype(xbar_ref.dtype)


# --------------------------------------------------------------------------
# Hardware / capability detection
# --------------------------------------------------------------------------
_HW_CACHE = None


def _tpu_hw():
    """Returns (vmem_capacity_bytes, tensorcores_per_chip, mxu_width).

    Conservative defaults when the query fails: 64 MiB VMEM, 1 core, 256 MXU.
    """
    global _HW_CACHE
    if _HW_CACHE is not None:
        return _HW_CACHE

    version = None
    try:
        kind = jax.devices()[0].device_kind
        m = re.search(r"(\d+)", kind)
        if m:
            version = int(m.group(1))
    except Exception:
        version = None

    vmem = None
    try:
        vmem = int(pltpu.get_tpu_info().vmem_capacity_bytes)
        if vmem < (16 << 20):
            vmem = None
    except Exception:
        vmem = None
    if vmem is None:
        # v5e/v6e (and older) have 128 MiB; v7x (and unknown) treated as 64 MiB.
        vmem = (128 << 20) if (version is not None and version <= 6) else (64 << 20)

    cores = 2 if (version is not None and version >= 7) else 1
    mxu = 256 if (version is not None and version >= 6) else 128
    _HW_CACHE = (vmem, cores, mxu)
    return _HW_CACHE


def _buffered_supported():
    try:
        pl.BlockSpec((8, 128), lambda i: (0, 0), pipeline_mode=pl.Buffered(1))
        return True
    except Exception:
        return False


_HAS_BUFFERED = hasattr(pl, "Buffered") and _buffered_supported()

_FALLBACK_ERRORS = (TypeError, ValueError, NotImplementedError)
if hasattr(pltpu, "LoweringException"):
    _FALLBACK_ERRORS = _FALLBACK_ERRORS + (pltpu.LoweringException,)


# --------------------------------------------------------------------------
# Helpers
# --------------------------------------------------------------------------
def _round_up(v, m):
    return (v + m - 1) // m * m


def _estimate_vmem(tb, ni, ne1, ne2, nz, param_bytes, param_copies, cbytes, obytes):
    """Per-core VMEM estimate for one batch tile.

    param_copies = 1 when params are single-buffered (pipeline_mode=Buffered(1)),
    2 when they go through the default double-buffered BlockSpec pipeline.
    """
    io = 2 * tb * ni * cbytes           # x tile (double-buffered)
    io += 2 * tb * ni * obytes          # x_bar tile (double-buffered)
    io += 2 * tb * nz * obytes          # z tile (double-buffered)
    # live intermediate activations (f32 accumulator + compute-dtype copy)
    acts = tb * (ne1 + ne2 + max(ni, ne1, ne2, nz)) * (4 + cbytes)
    return param_copies * param_bytes + io + acts


def _select_tile(B, row_align, ni, ne1, ne2, nz, param_bytes, param_copies,
                 cbytes, obytes, vmem_budget, cores, tile_b=None, max_rows=1024):
    if tile_b is not None:
        return max(row_align, _round_up(int(tile_b), row_align))
    tb = min(_round_up(B, row_align), max_rows)
    while tb > row_align and _estimate_vmem(
            tb, ni, ne1, ne2, nz, param_bytes, param_copies, cbytes, obytes) > vmem_budget:
        tb = max(row_align, (tb // 2) // row_align * row_align)
    # Split the single full-batch tile across the two TensorCores only on
    # chips that actually have two (v7x) and only when it adds at most one
    # alignment block of padded (dead) rows.
    if cores >= 2 and B >= 2 * row_align and tb >= _round_up(B, row_align):
        half = _round_up((B + 1) // 2, row_align)
        if half < tb and 2 * half <= _round_up(B, row_align) + row_align:
            tb = half
    return tb


# --------------------------------------------------------------------------
# Parameter preparation (pad + cast once, reuse across forward calls)
# --------------------------------------------------------------------------
_LAYERS = (("w1", "b1"), ("w2", "b2"), ("wz", "bz"),
           ("wd1", "bd1"), ("wd2", "bd2"), ("wx", "bx"))


class PreparedAEParams:
    """Lane-padded, compute-dtype-cast AE parameters (built once, reused)."""

    def __init__(self, tensors, dims, padded_dims, compute_dtype, param_bytes):
        self.tensors = tensors            # [w1,b1,w2,b2,wz,bz,wd1,bd1,wd2,bd2,wx,bx]
        self.dims = dims                  # (n_input, n_enc_1, n_enc_2, n_z)
        self.padded_dims = padded_dims    # (ni, ne1, ne2, nz)
        self.compute_dtype = compute_dtype
        self.param_bytes = param_bytes


def prepare_ae_params(params, *, compute_dtype=jnp.bfloat16, lane_multiple=None):
    n_input = params["w1"].shape[0]
    n_enc_1 = params["w1"].shape[1]
    n_enc_2 = params["w2"].shape[1]
    n_z = params["wz"].shape[1]

    if lane_multiple is None:
        _, _, mxu = _tpu_hw()
        wide_mult = 256 if mxu >= 256 else 128   # full-width MXU tiles on v6e/v7x
        z_mult = 128                             # never blow up n_z to 256
    else:
        wide_mult = z_mult = max(128, int(lane_multiple))

    ni = _round_up(n_input, wide_mult)
    ne1 = _round_up(n_enc_1, wide_mult)
    ne2 = _round_up(n_enc_2, wide_mult)
    nz = _round_up(n_z, z_mult)

    layer_dims = [(ni, ne1), (ne1, ne2), (ne2, nz), (nz, ne2), (ne2, ne1), (ne1, ni)]

    # Padded rows/cols and padded bias lanes are ZERO so padded lanes stay
    # exactly zero through every layer (relu(0) == 0).
    tensors = []
    for (wname, bname), (kp, np_) in zip(_LAYERS, layer_dims):
        w = jnp.asarray(params[wname])
        b = jnp.asarray(params[bname]).reshape(1, -1)
        wp = jnp.pad(w, ((0, kp - w.shape[0]), (0, np_ - w.shape[1])))
        bp = jnp.pad(b, ((0, 0), (0, np_ - b.shape[1])))
        tensors.append(wp.astype(compute_dtype))
        tensors.append(bp.astype(jnp.float32))

    param_bytes = sum(int(t.size) * t.dtype.itemsize for t in tensors)
    return PreparedAEParams(tensors, (n_input, n_enc_1, n_enc_2, n_z),
                            (ni, ne1, ne2, nz), jnp.dtype(compute_dtype), param_bytes)


# --------------------------------------------------------------------------
# Forward wrapper
# --------------------------------------------------------------------------
def ae_forward(x, params, *, tile_b=None, compute_dtype=jnp.bfloat16,
               lane_multiple=None, out_dtype=None, vmem_budget_bytes=None):
    """Returns (x_bar, z) — same semantics as the PyTorch module's forward.

    `params` may be either the raw dict (padded/cast per call) or a
    PreparedAEParams from prepare_ae_params() (recommended for training loops).
    """
    prepared = params if isinstance(params, PreparedAEParams) else prepare_ae_params(
        params, compute_dtype=compute_dtype, lane_multiple=lane_multiple)

    B, n_input = x.shape
    ni, ne1, ne2, nz = prepared.padded_dims
    n_z_true = prepared.dims[3]
    assert n_input == prepared.dims[0], "x feature dim does not match params"

    out_dtype = jnp.dtype(x.dtype if out_dtype is None else out_dtype)
    cdtype = prepared.compute_dtype
    cbytes = cdtype.itemsize
    obytes = out_dtype.itemsize
    row_align = 16 if cbytes < 4 else 8          # unmasked sublane tiles for bf16

    # Generation-aware VMEM limit/budget (leave headroom for compiler scratch).
    vmem_cap, cores, _ = _tpu_hw()
    vmem_limit = int(min(max(vmem_cap - (12 << 20), 32 << 20), 100 << 20))
    vmem_budget = (vmem_limit - (4 << 20)) if vmem_budget_bytes is None \
        else int(vmem_budget_bytes)

    layer_dims = [(ni, ne1), (ne1, ne2), (ne2, nz), (nz, ne2), (ne2, ne1), (ne1, ni)]

    def run(use_buffered_params):
        param_copies = 1 if use_buffered_params else 2
        tb = _select_tile(B, row_align, ni, ne1, ne2, nz, prepared.param_bytes,
                          param_copies, cbytes, obytes, vmem_budget, cores, tile_b)
        B_pad = _round_up(B, tb)
        grid = (B_pad // tb,)

        x_p = jnp.pad(x, ((0, B_pad - B), (0, ni - n_input))).astype(cdtype)

        flops = 2 * B_pad * sum(k * n for k, n in layer_dims)
        bytes_accessed = (int(x_p.size) * cbytes + prepared.param_bytes
                          + B_pad * (ni + nz) * obytes)
        cost = pl.CostEstimate(flops=flops, transcendentals=0,
                               bytes_accessed=bytes_accessed)

        x_map = lambda i: (i, 0)      # batch-tiled arrays
        p_map = lambda i: (0, 0)      # parameters: same (whole) block every step

        def param_spec(p):
            if use_buffered_params:
                # Constant block index -> single-buffered resident copy.
                return pl.BlockSpec(p.shape, p_map, pipeline_mode=pl.Buffered(1))
            return pl.BlockSpec(p.shape, p_map)

        in_specs = ([pl.BlockSpec((tb, ni), x_map)]
                    + [param_spec(p) for p in prepared.tensors])
        out_specs = (pl.BlockSpec((tb, ni), x_map),   # x_bar
                     pl.BlockSpec((tb, nz), x_map))   # z
        out_shape = (jax.ShapeDtypeStruct((B_pad, ni), out_dtype),
                     jax.ShapeDtypeStruct((B_pad, nz), out_dtype))

        call = pl.pallas_call(
            ae_kernel,
            grid_spec=pltpu.PrefetchScalarGridSpec(
                num_scalar_prefetch=0,
                grid=grid,
                in_specs=in_specs,
                out_specs=out_specs,
            ),
            out_shape=out_shape,
            compiler_params=pltpu.CompilerParams(
                dimension_semantics=("parallel",),
                vmem_limit_bytes=vmem_limit),
            cost_estimate=cost,
        )
        return call(x_p, *prepared.tensors)

    if _HAS_BUFFERED:
        try:
            xbar_p, z_p = run(True)
        except _FALLBACK_ERRORS:
            # pipeline_mode=Buffered(1) rejected by this Pallas/Mosaic version:
            # retry with default double-buffered params, re-sizing the batch
            # tile for the 2x param VMEM footprint.
            xbar_p, z_p = run(False)
    else:
        xbar_p, z_p = run(False)

    return xbar_p[:B, :n_input], z_p[:B, :n_z_true]


# --------------------------------------------------------------------------
# Deterministic parameter init (mimics PyTorch Linear default U(-1/sqrt(in), 1/sqrt(in)))
# --------------------------------------------------------------------------
def init_ae_params(key, n_enc_1, n_enc_2, n_input, n_z, dtype=jnp.float32):
    layer_dims = [
        ("w1", "b1", n_input, n_enc_1),   # enc_1
        ("w2", "b2", n_enc_1, n_enc_2),   # enc_2
        ("wz", "bz", n_enc_2, n_z),       # z_layer
        ("wd1", "bd1", n_z, n_enc_2),     # dec_1
        ("wd2", "bd2", n_enc_2, n_enc_1), # dec_2
        ("wx", "bx", n_enc_1, n_input),   # x_bar_layer
    ]
    params = {}
    for wname, bname, fan_in, fan_out in layer_dims:
        key, kw, kb = jax.random.split(key, 3)
        bound = 1.0 / jnp.sqrt(jnp.asarray(fan_in, dtype))
        params[wname] = jax.random.uniform(
            kw, (fan_in, fan_out), dtype, minval=-bound, maxval=bound)
        params[bname] = jax.random.uniform(
            kb, (1, fan_out), dtype, minval=-bound, maxval=bound)
    return params


# Pure-JAX reference mirroring the kernel's compute-dtype handling.
def ae_reference(x, p, compute_dtype=jnp.float32):
    cd = compute_dtype

    def dense(h, w, b, relu):
        y = jnp.dot(h.astype(cd), w.astype(cd),
                    preferred_element_type=jnp.float32) + b.astype(jnp.float32)
        return jnp.maximum(y, 0.0) if relu else y

    h1 = dense(x,  p["w1"],  p["b1"],  True)
    h2 = dense(h1, p["w2"],  p["b2"],  True)
    z  = dense(h2, p["wz"],  p["bz"],  False)
    d1 = dense(z,  p["wd1"], p["bd1"], True)
    d2 = dense(d1, p["wd2"], p["bd2"], True)
    xb = dense(d2, p["wx"],  p["bx"],  False)
    return xb.astype(x.dtype), z.astype(x.dtype)


if __name__ == "__main__":
    # Small shapes consistent with the module: AE(n_enc_1, n_enc_2, n_input, n_z)
    batch, n_input, n_enc_1, n_enc_2, n_z = 8, 32, 64, 32, 16

    key = jax.random.PRNGKey(0)
    key, kx, kx2 = jax.random.split(key, 3)
    x = jax.random.normal(kx, (batch, n_input), jnp.float32)

    params = init_ae_params(key, n_enc_1, n_enc_2, n_input, n_z)

    # Prepare (pad + cast) the parameters ONCE and reuse them.
    prepared_bf16 = prepare_ae_params(params, compute_dtype=jnp.bfloat16)

    # bf16-MXU path (default), single grid step.
    x_bar, z = ae_forward(x, prepared_bf16)
    jax.block_until_ready((x_bar, z))
    xb_ref, z_ref = ae_reference(x, params, compute_dtype=jnp.bfloat16)
    assert x_bar.shape == (batch, n_input) and z.shape == (batch, n_z)
    assert jnp.allclose(x_bar, xb_ref, atol=1e-2, rtol=1e-2)
    assert jnp.allclose(z, z_ref, atol=1e-2, rtol=1e-2)

    # Multi-step grid (pipelined batch tiles) with the same prepared params.
    x_big = jax.random.normal(kx2, (48, n_input), jnp.float32)
    xb_big, z_big = ae_forward(x_big, prepared_bf16, tile_b=16)
    jax.block_until_ready((xb_big, z_big))
    xb_big_ref, z_big_ref = ae_reference(x_big, params, compute_dtype=jnp.bfloat16)
    assert xb_big.shape == (48, n_input) and z_big.shape == (48, n_z)
    assert jnp.allclose(xb_big, xb_big_ref, atol=1e-2, rtol=1e-2)
    assert jnp.allclose(z_big, z_big_ref, atol=1e-2, rtol=1e-2)

    # Full-f32 path (near-exact check against the plain f32 reference).
    x_bar32, z32 = ae_forward(x, params, compute_dtype=jnp.float32)
    jax.block_until_ready((x_bar32, z32))
    xb_ref32, z_ref32 = ae_reference(x, params, compute_dtype=jnp.float32)
    assert jnp.allclose(x_bar32, xb_ref32, atol=1e-4, rtol=1e-4)
    assert jnp.allclose(z32, z_ref32, atol=1e-4, rtol=1e-4)

    print("KERNEL_OK")
</pallas_src>

<mosaic_0001>
module attributes {stable_mosaic.version = 11 : i64} {
  func.func @ae_kernel(%arg0: i32, %arg1: memref<16x128xbf16, #tpu.memory_space<vmem>>, %arg2: memref<128x128xbf16, #tpu.memory_space<vmem>>, %arg3: memref<1x128xf32, #tpu.memory_space<vmem>>, %arg4: memref<128x128xbf16, #tpu.memory_space<vmem>>, %arg5: memref<1x128xf32, #tpu.memory_space<vmem>>, %arg6: memref<128x128xbf16, #tpu.memory_space<vmem>>, %arg7: memref<1x128xf32, #tpu.memory_space<vmem>>, %arg8: memref<128x128xbf16, #tpu.memory_space<vmem>>, %arg9: memref<1x128xf32, #tpu.memory_space<vmem>>, %arg10: memref<128x128xbf16, #tpu.memory_space<vmem>>, %arg11: memref<1x128xf32, #tpu.memory_space<vmem>>, %arg12: memref<128x128xbf16, #tpu.memory_space<vmem>>, %arg13: memref<1x128xf32, #tpu.memory_space<vmem>>, %arg14: memref<16x128xf32, #tpu.memory_space<vmem>>, %arg15: memref<16x128xf32, #tpu.memory_space<vmem>>) attributes {dimension_semantics = [#tpu.dimension_semantics<parallel>], iteration_bounds = array<i64: 1>, scalar_prefetch = 0 : i64, scratch_operands = 0 : i64, tpu.core_type = #tpu.core_type<tc>, window_params = [{transform_indices = @transform_0, window_bounds = array<i64: 16, 128>}, {pipeline_mode = #tpu.pipeline_mode<synchronous>, transform_indices = @transform_1, window_bounds = array<i64: 128, 128>}, {pipeline_mode = #tpu.pipeline_mode<synchronous>, transform_indices = @transform_2, window_bounds = array<i64: 1, 128>}, {pipeline_mode = #tpu.pipeline_mode<synchronous>, transform_indices = @transform_3, window_bounds = array<i64: 128, 128>}, {pipeline_mode = #tpu.pipeline_mode<synchronous>, transform_indices = @transform_4, window_bounds = array<i64: 1, 128>}, {pipeline_mode = #tpu.pipeline_mode<synchronous>, transform_indices = @transform_5, window_bounds = array<i64: 128, 128>}, {pipeline_mode = #tpu.pipeline_mode<synchronous>, transform_indices = @transform_6, window_bounds = array<i64: 1, 128>}, {pipeline_mode = #tpu.pipeline_mode<synchronous>, transform_indices = @transform_7, window_bounds = array<i64: 128, 128>}, {pipeline_mode = #tpu.pipeline_mode<synchronous>, transform_indices = @transform_8, window_bounds = array<i64: 1, 128>}, {pipeline_mode = #tpu.pipeline_mode<synchronous>, transform_indices = @transform_9, window_bounds = array<i64: 128, 128>}, {pipeline_mode = #tpu.pipeline_mode<synchronous>, transform_indices = @transform_10, window_bounds = array<i64: 1, 128>}, {pipeline_mode = #tpu.pipeline_mode<synchronous>, transform_indices = @transform_11, window_bounds = array<i64: 128, 128>}, {pipeline_mode = #tpu.pipeline_mode<synchronous>, transform_indices = @transform_12, window_bounds = array<i64: 1, 128>}, {transform_indices = @transform_13, window_bounds = array<i64: 16, 128>}, {transform_indices = @transform_14, window_bounds = array<i64: 16, 128>}]} {
    %c0 = arith.constant 0 : index
    %c0_0 = arith.constant 0 : index
    %0 = vector.load %arg1[%c0, %c0_0] : memref<16x128xbf16, #tpu.memory_space<vmem>>, vector<16x128xbf16>
    %c0_1 = arith.constant 0 : index
    %c0_2 = arith.constant 0 : index
    %1 = vector.load %arg2[%c0_1, %c0_2] : memref<128x128xbf16, #tpu.memory_space<vmem>>, vector<128x128xbf16>
    %cst = arith.constant dense<0.000000e+00> : vector<16x128xf32>
    %2 = tpu.matmul %0, %1, %cst {dimension_numbers = #tpu.dot_dimension_numbers<[1], [0], [0], [1], [0, 0, 1, 1], [], []>} : vector<16x128xbf16>, vector<128x128xbf16>, vector<16x128xf32> -> vector<16x128xf32>
    %c0_3 = arith.constant 0 : index
    %c0_4 = arith.constant 0 : index
    %3 = vector.load %arg3[%c0_3, %c0_4] : memref<1x128xf32, #tpu.memory_space<vmem>>, vector<1x128xf32>
    %4 = vector.broadcast %3 : vector<1x128xf32> to vector<16x128xf32>
    %5 = arith.addf %2, %4 : vector<16x128xf32>
    %cst_5 = arith.constant 0.000000e+00 : f32
    %6 = vector.broadcast %cst_5 : f32 to vector<16x128xf32>
    %7 = arith.maximumf %5, %6 : vector<16x128xf32>
    %8 = arith.truncf %7 : vector<16x128xf32> to vector<16x128xbf16>
    %c0_6 = arith.constant 0 : index
    %c0_7 = arith.constant 0 : index
    %9 = vector.load %arg4[%c0_6, %c0_7] : memref<128x128xbf16, #tpu.memory_space<vmem>>, vector<128x128xbf16>
    %cst_8 = arith.constant dense<0.000000e+00> : vector<16x128xf32>
    %10 = tpu.matmul %8, %9, %cst_8 {dimension_numbers = #tpu.dot_dimension_numbers<[1], [0], [0], [1], [0, 0, 1, 1], [], []>} : vector<16x128xbf16>, vector<128x128xbf16>, vector<16x128xf32> -> vector<16x128xf32>
    %c0_9 = arith.constant 0 : index
    %c0_10 = arith.constant 0 : index
    %11 = vector.load %arg5[%c0_9, %c0_10] : memref<1x128xf32, #tpu.memory_space<vmem>>, vector<1x128xf32>
    %12 = vector.broadcast %11 : vector<1x128xf32> to vector<16x128xf32>
    %13 = arith.addf %10, %12 : vector<16x128xf32>
    %cst_11 = arith.constant 0.000000e+00 : f32
    %14 = vector.broadcast %cst_11 : f32 to vector<16x128xf32>
    %15 = arith.maximumf %13, %14 : vector<16x128xf32>
    %16 = arith.truncf %15 : vector<16x128xf32> to vector<16x128xbf16>
    %c0_12 = arith.constant 0 : index
    %c0_13 = arith.constant 0 : index
    %17 = vector.load %arg6[%c0_12, %c0_13] : memref<128x128xbf16, #tpu.memory_space<vmem>>, vector<128x128xbf16>
    %cst_14 = arith.constant dense<0.000000e+00> : vector<16x128xf32>
    %18 = tpu.matmul %16, %17, %cst_14 {dimension_numbers = #tpu.dot_dimension_numbers<[1], [0], [0], [1], [0, 0, 1, 1], [], []>} : vector<16x128xbf16>, vector<128x128xbf16>, vector<16x128xf32> -> vector<16x128xf32>
    %c0_15 = arith.constant 0 : index
    %c0_16 = arith.constant 0 : index
    %19 = vector.load %arg7[%c0_15, %c0_16] : memref<1x128xf32, #tpu.memory_space<vmem>>, vector<1x128xf32>
    %20 = vector.broadcast %19 : vector<1x128xf32> to vector<16x128xf32>
    %21 = arith.addf %18, %20 : vector<16x128xf32>
    %22 = arith.truncf %21 : vector<16x128xf32> to vector<16x128xbf16>
    %c0_17 = arith.constant 0 : index
    %c0_18 = arith.constant 0 : index
    %23 = vector.load %arg8[%c0_17, %c0_18] : memref<128x128xbf16, #tpu.memory_space<vmem>>, vector<128x128xbf16>
    %cst_19 = arith.constant dense<0.000000e+00> : vector<16x128xf32>
    %24 = tpu.matmul %22, %23, %cst_19 {dimension_numbers = #tpu.dot_dimension_numbers<[1], [0], [0], [1], [0, 0, 1, 1], [], []>} : vector<16x128xbf16>, vector<128x128xbf16>, vector<16x128xf32> -> vector<16x128xf32>
    %c0_20 = arith.constant 0 : index
    %c0_21 = arith.constant 0 : index
    %25 = vector.load %arg9[%c0_20, %c0_21] : memref<1x128xf32, #tpu.memory_space<vmem>>, vector<1x128xf32>
    %26 = vector.broadcast %25 : vector<1x128xf32> to vector<16x128xf32>
    %27 = arith.addf %24, %26 : vector<16x128xf32>
    %cst_22 = arith.constant 0.000000e+00 : f32
    %28 = vector.broadcast %cst_22 : f32 to vector<16x128xf32>
    %29 = arith.maximumf %27, %28 : vector<16x128xf32>
    %30 = arith.truncf %29 : vector<16x128xf32> to vector<16x128xbf16>
    %c0_23 = arith.constant 0 : index
    %c0_24 = arith.constant 0 : index
    %31 = vector.load %arg10[%c0_23, %c0_24] : memref<128x128xbf16, #tpu.memory_space<vmem>>, vector<128x128xbf16>
    %cst_25 = arith.constant dense<0.000000e+00> : vector<16x128xf32>
    %32 = tpu.matmul %30, %31, %cst_25 {dimension_numbers = #tpu.dot_dimension_numbers<[1], [0], [0], [1], [0, 0, 1, 1], [], []>} : vector<16x128xbf16>, vector<128x128xbf16>, vector<16x128xf32> -> vector<16x128xf32>
    %c0_26 = arith.constant 0 : index
    %c0_27 = arith.constant 0 : index
    %33 = vector.load %arg11[%c0_26, %c0_27] : memref<1x128xf32, #tpu.memory_space<vmem>>, vector<1x128xf32>
    %34 = vector.broadcast %33 : vector<1x128xf32> to vector<16x128xf32>
    %35 = arith.addf %32, %34 : vector<16x128xf32>
    %cst_28 = arith.constant 0.000000e+00 : f32
    %36 = vector.broadcast %cst_28 : f32 to vector<16x128xf32>
    %37 = arith.maximumf %35, %36 : vector<16x128xf32>
    %38 = arith.truncf %37 : vector<16x128xf32> to vector<16x128xbf16>
    %c0_29 = arith.constant 0 : index
    %c0_30 = arith.constant 0 : index
    %39 = vector.load %arg12[%c0_29, %c0_30] : memref<128x128xbf16, #tpu.memory_space<vmem>>, vector<128x128xbf16>
    %cst_31 = arith.constant dense<0.000000e+00> : vector<16x128xf32>
    %40 = tpu.matmul %38, %39, %cst_31 {dimension_numbers = #tpu.dot_dimension_numbers<[1], [0], [0], [1], [0, 0, 1, 1], [], []>} : vector<16x128xbf16>, vector<128x128xbf16>, vector<16x128xf32> -> vector<16x128xf32>
    %c0_32 = arith.constant 0 : index
    %c0_33 = arith.constant 0 : index
    %41 = vector.load %arg13[%c0_32, %c0_33] : memref<1x128xf32, #tpu.memory_space<vmem>>, vector<1x128xf32>
    %42 = vector.broadcast %41 : vector<1x128xf32> to vector<16x128xf32>
    %43 = arith.addf %40, %42 : vector<16x128xf32>
    %c0_34 = arith.constant 0 : index
    %c0_35 = arith.constant 0 : index
    %44 = vector.load %arg15[%c0_34, %c0_35] : memref<16x128xf32, #tpu.memory_space<vmem>>, vector<16x128xf32>
    tpu.vector_store %arg15[%c0_34, %c0_35], %21 {strides = array<i32>} : memref<16x128xf32, #tpu.memory_space<vmem>>, vector<16x128xf32>,
    %c0_36 = arith.constant 0 : index
    %c0_37 = arith.constant 0 : index
    %45 = vector.load %arg14[%c0_36, %c0_37] : memref<16x128xf32, #tpu.memory_space<vmem>>, vector<16x128xf32>
    tpu.vector_store %arg14[%c0_36, %c0_37], %43 {strides = array<i32>} : memref<16x128xf32, #tpu.memory_space<vmem>>, vector<16x128xf32>,
    return
  }
  func.func @transform_0(%arg0: i32) -> (i32, i32) {
    %c0_i32 = arith.constant 0 : i32
    %c0_i32_0 = arith.constant 0 : i32
    return %arg0, %c0_i32 : i32, i32
  }
  func.func @transform_1(%arg0: i32) -> (i32, i32) {
    %c0_i32 = arith.constant 0 : i32
    %c0_i32_0 = arith.constant 0 : i32
    %c0_i32_1 = arith.constant 0 : i32
    return %c0_i32, %c0_i32_0 : i32, i32
  }
  func.func @transform_2(%arg0: i32) -> (i32, i32) {
    %c0_i32 = arith.constant 0 : i32
    %c0_i32_0 = arith.constant 0 : i32
    %c0_i32_1 = arith.constant 0 : i32
    return %c0_i32, %c0_i32_0 : i32, i32
  }
  func.func @transform_3(%arg0: i32) -> (i32, i32) {
    %c0_i32 = arith.constant 0 : i32
    %c0_i32_0 = arith.constant 0 : i32
    %c0_i32_1 = arith.constant 0 : i32
    return %c0_i32, %c0_i32_0 : i32, i32
  }
  func.func @transform_4(%arg0: i32) -> (i32, i32) {
    %c0_i32 = arith.constant 0 : i32
    %c0_i32_0 = arith.constant 0 : i32
    %c0_i32_1 = arith.constant 0 : i32
    return %c0_i32, %c0_i32_0 : i32, i32
  }
  func.func @transform_5(%arg0: i32) -> (i32, i32) {
    %c0_i32 = arith.constant 0 : i32
    %c0_i32_0 = arith.constant 0 : i32
    %c0_i32_1 = arith.constant 0 : i32
    return %c0_i32, %c0_i32_0 : i32, i32
  }
  func.func @transform_6(%arg0: i32) -> (i32, i32) {
    %c0_i32 = arith.constant 0 : i32
    %c0_i32_0 = arith.constant 0 : i32
    %c0_i32_1 = arith.constant 0 : i32
    return %c0_i32, %c0_i32_0 : i32, i32
  }
  func.func @transform_7(%arg0: i32) -> (i32, i32) {
    %c0_i32 = arith.constant 0 : i32
    %c0_i32_0 = arith.constant 0 : i32
    %c0_i32_1 = arith.constant 0 : i32
    return %c0_i32, %c0_i32_0 : i32, i32
  }
  func.func @transform_8(%arg0: i32) -> (i32, i32) {
    %c0_i32 = arith.constant 0 : i32
    %c0_i32_0 = arith.constant 0 : i32
    %c0_i32_1 = arith.constant 0 : i32
    return %c0_i32, %c0_i32_0 : i32, i32
  }
  func.func @transform_9(%arg0: i32) -> (i32, i32) {
    %c0_i32 = arith.constant 0 : i32
    %c0_i32_0 = arith.constant 0 : i32
    %c0_i32_1 = arith.constant 0 : i32
    return %c0_i32, %c0_i32_0 : i32, i32
  }
  func.func @transform_10(%arg0: i32) -> (i32, i32) {
    %c0_i32 = arith.constant 0 : i32
    %c0_i32_0 = arith.constant 0 : i32
    %c0_i32_1 = arith.constant 0 : i32
    return %c0_i32, %c0_i32_0 : i32, i32
  }
  func.func @transform_11(%arg0: i32) -> (i32, i32) {
    %c0_i32 = arith.constant 0 : i32
    %c0_i32_0 = arith.constant 0 : i32
    %c0_i32_1 = arith.constant 0 : i32
    return %c0_i32, %c0_i32_0 : i32, i32
  }
  func.func @transform_12(%arg0: i32) -> (i32, i32) {
    %c0_i32 = arith.constant 0 : i32
    %c0_i32_0 = arith.constant 0 : i32
    %c0_i32_1 = arith.constant 0 : i32
    return %c0_i32, %c0_i32_0 : i32, i32
  }
  func.func @transform_13(%arg0: i32) -> (i32, i32) {
    %c0_i32 = arith.constant 0 : i32
    %c0_i32_0 = arith.constant 0 : i32
    return %arg0, %c0_i32 : i32, i32
  }
  func.func @transform_14(%arg0: i32) -> (i32, i32) {
    %c0_i32 = arith.constant 0 : i32
    %c0_i32_0 = arith.constant 0 : i32
    return %arg0, %c0_i32 : i32, i32
  }
}

</mosaic_0001>

<bundles_post_ra>
// kernel: tpu_custom_call.1
= control target key start
LH: loop header
LB: loop body
LE: loop exit
PB: predicated region body
PF: predicated region fallthrough
CT: control target
= control target key end

     0   :  { %20 = vsyncpa [#allocation3], 0  ;;  %s1704_s0 = inlined_call_operand.hbm [shape: bf16[16,128], index: 0, kind: input, shape index: {}]   ;;  %s1705_s1 = inlined_call_operand.hbm [shape: bf16[128,128], index: 1, kind: input, shape index: {}]   ;;  %s1706_s2 = inlined_call_operand.vmem [shape: f32[1,128], index: 2, kind: input, shape index: {}]   ;;  %s1707_s3 = inlined_call_operand.hbm [shape: bf16[128,128], index: 3, kind: input, shape index: {}]   ;;  %s1708_s4 = inlined_call_operand.vmem [shape: f32[1,128], index: 4, kind: input, shape index: {}]   ;;  %s1709_s5 = inlined_call_operand.hbm [shape: bf16[128,128], index: 5, kind: input, shape index: {}]   ;;  %s1710_s6 = inlined_call_operand.vmem [shape: f32[1,128], index: 6, kind: input, shape index: {}]   ;;  %s1711_s7 = inlined_call_operand.hbm [shape: bf16[128,128], index: 7, kind: input, shape index: {}]   ;;  %s1712_s8 = inlined_call_operand.vmem [shape: f32[1,128], index: 8, kind: input, shape index: {}]   ;;  %s1713_s9 = inlined_call_operand.hbm [shape: bf16[128,128], index: 9, kind: input, shape index: {}]   ;;  %s1714_s10 = inlined_call_operand.vmem [shape: f32[1,128], index: 10, kind: input, shape index: {}]   ;;  %s1715_s11 = inlined_call_operand.hbm [shape: bf16[128,128], index: 11, kind: input, shape index: {}]   ;;  %s1716_s12 = inlined_call_operand.vmem [shape: f32[1,128], index: 12, kind: input, shape index: {}]   ;;  %s1717_s13 = inlined_call_operand.hbm [shape: f32[16,128], index: 13, kind: output, shape index: {0}]   ;;  %s1718_s14 = inlined_call_operand.hbm [shape: f32[16,128], index: 14, kind: output, shape index: {1}]  }
   0x1   :  { %21 = vsyncpa [#allocation6], 0 }
   0x2   :  { %22 = vsyncpa [#allocation9], 0 }
   0x3   :  { %23 = vsyncpa [#allocation12], 0 }
   0x4   :  { %24 = vsyncpa [#allocation4], 0 }
   0x5   :  { %25 = vsyncpa [#allocation16], 0  ;;  %s1380_s29 = smov [#allocation5]   ;;  %s1381_s15 = smov [#allocation8]  }
   0x6   :  { %s43_s30 = sshll.u32 %s1380_s29, 4  ;;  %s71_s16 = sshll.u32 %s1381_s15, 4  ;;  %s44_s30 = int_to_ptr.vmem [resolvable:$true] %s43_s30  ;;  %s1470_s16 = int_to_ptr.vmem [resolvable:$true] %s71_s16 }
   0x7   :  { %s1170_s19 = scalar_lea.hbm %s1705_s1, 1024 }
   0x8   :  { %p1171_p0 = scmp.ne.s32.totalorder %s1705_s1, %s1170_s19  ;;  %p1174_p1 = scmp.lt.u32.totalorder %s1170_s19, %s1705_s1 }
   0xa   :  { %p1176_p2 = pnand %p1174_p1, %p1171_p0 }
   0xc   :  { %1179 = shalt.err (!%p1176_p2)
}
   0xd   :  { %s1180_s24 = scalar_lea.vmem %s44_s30, 1024  ;;  %p1185_p4 = scmp.lt.s32.totalorder %s44_s30, %s44_s30 }
   0xe   :  { %p1181_p3 = scmp.ne.s32.totalorder %s44_s30, %s1180_s24  ;;  %p1186_p5 = scmp.lt.s32.totalorder %s1180_s24, %s1180_s24 }
  0x10   :  { %p1187_p6 = por %p1186_p5, %p1185_p4 }
  0x12   :  { %p1188_p7 = pnand %p1187_p6, %p1181_p3 }
  0x14   :  { %1191 = shalt.err (!%p1188_p7)
}
  0x15   :  { %s1382_s25 = smov 64   ;;  %s1383_s26 = smov 4  }
  0x16   :  { %49 = dma.hbm_to_vmem [thread:$0]  %s1705_s1, 1024, %s44_s30, [#allocation6], %s1382_s25, %s1382_s25, %s1383_s26  }
  0x17   :  { %s1192_s17 = scalar_lea.hbm %s1709_s5, 1024 }
  0x18   :  { %p1193_p8 = scmp.ne.s32.totalorder %s1709_s5, %s1192_s17  ;;  %p1196_p9 = scmp.lt.u32.totalorder %s1192_s17, %s1709_s5 }
  0x1a   :  { %p1198_p10 = pnand %p1196_p9, %p1193_p8 }
  0x1c   :  { %1201 = shalt.err (!%p1198_p10)
}
  0x1d   :  { %s1202_s22 = scalar_lea.vmem %s1470_s16, 1024  ;;  %p1207_p12 = scmp.lt.s32.totalorder %s1470_s16, %s1470_s16 }
  0x1e   :  { %p1203_p11 = scmp.ne.s32.totalorder %s1470_s16, %s1202_s22  ;;  %p1208_p13 = scmp.lt.s32.totalorder %s1202_s22, %s1202_s22 }
  0x20   :  { %p1209_p0 = por %p1208_p13, %p1207_p12 }
  0x22   :  { %p1210_p1 = pnand %p1209_p0, %p1203_p11 }
  0x24   :  { %1213 = shalt.err (!%p1210_p1)
}
  0x25   :  { %77 = dma.hbm_to_vmem [thread:$0]  %s1709_s5, 1024, %s1470_s16, [#allocation9], %s1382_s25, %s1382_s25, %s1383_s26  }
  0x26   :  { %s1384_s23 = smov [#allocation11]   ;;  %s1385_s27 = smov [#allocation2]  }
  0x27   :  { %s99_s24 = sshll.u32 %s1384_s23, 4  ;;  %s31_s28 = sshll.u32 %s1385_s27, 4  ;;  %s100_s24 = int_to_ptr.vmem [resolvable:$true] %s99_s24  ;;  %s1507_s28 = int_to_ptr.vmem [resolvable:$true] %s31_s28 }
  0x28   :  { %s1214_s17 = scalar_lea.hbm %s1713_s9, 1024 }
  0x29   :  { %p1215_p2 = scmp.ne.s32.totalorder %s1713_s9, %s1214_s17  ;;  %p1218_p3 = scmp.lt.u32.totalorder %s1214_s17, %s1713_s9 }
  0x2b   :  { %p1220_p4 = pnand %p1218_p3, %p1215_p2 }
  0x2d   :  { %1223 = shalt.err (!%p1220_p4)
}
  0x2e   :  { %s1224_s5 = scalar_lea.vmem %s100_s24, 1024  ;;  %p1229_p6 = scmp.lt.s32.totalorder %s100_s24, %s100_s24 }
  0x2f   :  { %p1225_p5 = scmp.ne.s32.totalorder %s100_s24, %s1224_s5  ;;  %p1230_p7 = scmp.lt.s32.totalorder %s1224_s5, %s1224_s5 }
  0x31   :  { %p1231_p8 = por %p1230_p7, %p1229_p6 }
  0x33   :  { %p1232_p9 = pnand %p1231_p8, %p1225_p5 }
  0x35   :  { %1235 = shalt.err (!%p1232_p9)
}
  0x36   :  { %105 = dma.hbm_to_vmem [thread:$0]  %s1713_s9, 1024, %s100_s24, [#allocation12], %s1382_s25, %s1382_s25, %s1383_s26  }
  0x37   :  { %s1236_s23 = scalar_lea.hbm %s1704_s0, 128 }
  0x38   :  { %p1237_p10 = scmp.ne.s32.totalorder %s1704_s0, %s1236_s23  ;;  %p1240_p11 = scmp.lt.u32.totalorder %s1236_s23, %s1704_s0 }
  0x3a   :  { %p1242_p12 = pnand %p1240_p11, %p1237_p10 }
  0x3c   :  { %1245 = shalt.err (!%p1242_p12)
}
  0x3d   :  { %s1246_s18 = scalar_lea.vmem %s1507_s28, 128  ;;  %p1251_p0 = scmp.lt.s32.totalorder %s1507_s28, %s1507_s28 }
  0x3e   :  { %p1247_p13 = scmp.ne.s32.totalorder %s1507_s28, %s1246_s18  ;;  %p1252_p1 = scmp.lt.s32.totalorder %s1246_s18, %s1246_s18 }
  0x40   :  { %p1253_p2 = por %p1252_p1, %p1251_p0 }
  0x42   :  { %p1254_p3 = pnand %p1253_p2, %p1247_p13 }
  0x44   :  { %1257 = shalt.err (!%p1254_p3)
}
  0x45   :  { %37 = dma.hbm_to_vmem [thread:$0]  %s1704_s0, 128, %s1507_s28, [#allocation3], %s1382_s25, %s1382_s25, %s1383_s26  }
  0x46   :  { %s1386_s19 = smov [#allocation7]   ;;  %s1387_s21 = smov [#allocation10]  }
  0x47   :  { %s57_s20 = sshll.u32 %s1386_s19, 4  ;;  %s85_s5 = sshll.u32 %s1387_s21, 4  ;;  %s58_s20 = int_to_ptr.vmem [resolvable:$true] %s57_s20  ;;  %s1544_s5 = int_to_ptr.vmem [resolvable:$true] %s85_s5 }
  0x48   :  { %s1258_s1 = scalar_lea.hbm %s1707_s3, 1024 }
  0x49   :  { %p1259_p4 = scmp.ne.s32.totalorder %s1707_s3, %s1258_s1  ;;  %p1262_p5 = scmp.lt.u32.totalorder %s1258_s1, %s1707_s3 }
  0x4b   :  { %p1264_p6 = pnand %p1262_p5, %p1259_p4 }
  0x4d   :  { %1267 = shalt.err (!%p1264_p6)
}
  0x4e   :  { %s1268_s0 = scalar_lea.vmem %s58_s20, 1024  ;;  %p1273_p8 = scmp.lt.s32.totalorder %s58_s20, %s58_s20 }
  0x4f   :  { %p1269_p7 = scmp.ne.s32.totalorder %s58_s20, %s1268_s0  ;;  %p1274_p9 = scmp.lt.s32.totalorder %s1268_s0, %s1268_s0 }
  0x51   :  { %p1275_p10 = por %p1274_p9, %p1273_p8 }
  0x53   :  { %p1276_p11 = pnand %p1275_p10, %p1269_p7 }
  0x55   :  { %1279 = shalt.err (!%p1276_p11)
}
  0x56   :  { %63 = dma.hbm_to_vmem [thread:$0]  %s1707_s3, 1024, %s58_s20, [#allocation6], %s1382_s25, %s1382_s25, %s1383_s26  }
  0x57   :  { %s1280_s9 = scalar_lea.hbm %s1711_s7, 1024 }
  0x58   :  { %p1281_p12 = scmp.ne.s32.totalorder %s1711_s7, %s1280_s9  ;;  %p1284_p13 = scmp.lt.u32.totalorder %s1280_s9, %s1711_s7 }
  0x5a   :  { %p1286_p0 = pnand %p1284_p13, %p1281_p12 }
  0x5c   :  { %1289 = shalt.err (!%p1286_p0)
}
  0x5d   :  { %s1290_s22 = scalar_lea.vmem %s1544_s5, 1024  ;;  %p1295_p2 = scmp.lt.s32.totalorder %s1544_s5, %s1544_s5 }
  0x5e   :  { %p1291_p1 = scmp.ne.s32.totalorder %s1544_s5, %s1290_s22  ;;  %p1296_p3 = scmp.lt.s32.totalorder %s1290_s22, %s1290_s22 }
  0x60   :  { %p1297_p4 = por %p1296_p3, %p1295_p2 }
  0x62   :  { %p1298_p5 = pnand %p1297_p4, %p1291_p1 }
  0x64   :  { %1301 = shalt.err (!%p1298_p5)
}
  0x65   :  { %91 = dma.hbm_to_vmem [thread:$0]  %s1711_s7, 1024, %s1544_s5, [#allocation9], %s1382_s25, %s1382_s25, %s1383_s26  }
  0x66   :  { %s1388_s1 = smov [#allocation13]   ;;  %s1302_s29 = scalar_lea.hbm %s1715_s11, 1024 }
  0x67   :  { %s113_s30 = sshll.u32 %s1388_s1, 4  ;;  %p1303_p6 = scmp.ne.s32.totalorder %s1715_s11, %s1302_s29  ;;  %s114_s30 = int_to_ptr.vmem [resolvable:$true] %s113_s30 }
  0x68   :  { %p1306_p7 = scmp.lt.u32.totalorder %s1302_s29, %s1715_s11 }
  0x6a   :  { %p1308_p8 = pnand %p1306_p7, %p1303_p6 }
  0x6c   :  { %1311 = shalt.err (!%p1308_p8)
}
  0x6d   :  { %s1312_s18 = scalar_lea.vmem %s114_s30, 1024  ;;  %p1317_p10 = scmp.lt.s32.totalorder %s114_s30, %s114_s30 }
  0x6e   :  { %p1313_p9 = scmp.ne.s32.totalorder %s114_s30, %s1312_s18  ;;  %p1318_p11 = scmp.lt.s32.totalorder %s1312_s18, %s1312_s18 }
  0x70   :  { %p1319_p12 = por %p1318_p11, %p1317_p10 }
  0x72   :  { %p1320_p13 = pnand %p1319_p12, %p1313_p9 }
  0x74   :  { %1323 = shalt.err (!%p1320_p13)
}
  0x75   :  { %119 = dma.hbm_to_vmem [thread:$0]  %s1715_s11, 1024, %s114_s30, [#allocation12], %s1382_s25, %s1382_s25, %s1383_s26  }
  0x76   :  { %1368 = dma.done.wait [#allocation3], 128  }
  0x77   :  { %1369 = vsyncadd [#allocation3], 4294967168 }
  0x78   :  { %1370 = dma.done.wait [#allocation6], 2048  }
  0x79   :  { %1371 = vsyncadd [#allocation6], 4294965248 }
  0x7a   :  { %1372 = dma.done.wait [#allocation9], 2048  }
  0x7b   :  { %1373 = vsyncadd [#allocation9], 4294965248 }
  0x7c   :  { %1374 = dma.done.wait [#allocation12], 2048  }
  0x7d   :  { %1375 = vsyncadd [#allocation12], 4294965248  ;;  %v1389_v0 = vmov 0.0   ;;  %vm1390_vm0 = vmmov 0   ;;  %v1121_v1 = vld [vmem:[#allocation5] sm:$0xff]   ;;  %v1122_v2 = vld [vmem:[#allocation5 + $0x8] sm:$0xff]  }
  0x7e   :  { %986 = vmatprep.subr.bf16.mxu0 %v1389_v0  ;;  %1002 = vmatprep.mubr.msk.bf16.mxu0 %vm1390_vm0, %v1389_v0  ;;  %v1123_v3 = vld [vmem:[#allocation5 + $0x10] sm:$0xff]   ;;  %v1130_v4 = vld [vmem:[#allocation7] sm:$0xff]   ;;  %v1124_v5 = vld [vmem:[#allocation5 + $0x18] sm:$0xff]  }
  0x7f   :  { %1006 = vmatprep.subr.bf16.mxu1 %v1389_v0  ;;  %1022 = vmatprep.mubr.msk.bf16.mxu1 %vm1390_vm0, %v1389_v0  ;;  %v1131_v6 = vld [vmem:[#allocation7 + $0x8] sm:$0xff]   ;;  %v1125_v7 = vld [vmem:[#allocation5 + $0x20] sm:$0xff]   ;;  %v1132_v8 = vld [vmem:[#allocation7 + $0x10] sm:$0xff]  }
  0x80   :  { %987 = vmatpush3.bf16.msra.mxu0 %v1121_v1  ;;  %1007 = vmatpush3.bf16.msra.mxu1 %v1130_v4  ;;  %v1126_v9 = vld [vmem:[#allocation5 + $0x28] sm:$0xff]   ;;  %v1133_v10 = vld [vmem:[#allocation7 + $0x18] sm:$0xff]   ;;  %v1127_v11 = vld [vmem:[#allocation5 + $0x30] sm:$0xff]  }
  0x81   :  { %988 = vmatprep.subr.bf16.mxu0 %v1389_v0  ;;  %1008 = vmatprep.subr.bf16.mxu1 %v1389_v0  ;;  %v1134_v12 = vld [vmem:[#allocation7 + $0x20] sm:$0xff]   ;;  %v1128_v13 = vld [vmem:[#allocation5 + $0x38] sm:$0xff]   ;;  %v1135_v14 = vld [vmem:[#allocation7 + $0x28] sm:$0xff]  }
  0x82   :  { %v1129_v15 = vld [vmem:[#allocation2] sm:$0xff]   ;;  %v1136_v16 = vld [vmem:[#allocation7 + $0x30] sm:$0xff]   ;;  %v1138_v18 = vld [vmem:[#allocation8] sm:$0xff]  }
  0x83   :  { %v1137_v17 = vld [vmem:[#allocation7 + $0x38] sm:$0xff]   ;;  %v1139_v19 = vld [vmem:[#allocation8 + $0x8] sm:$0xff]   ;;  %v1140_v20 = vld [vmem:[#allocation8 + $0x10] sm:$0xff]  }
  0x84   :  { %989 = vmatpush3.bf16.msra.mxu0 %v1122_v2  ;;  %1009 = vmatpush3.bf16.msra.mxu1 %v1131_v6  ;;  %v1141_v21 = vld [vmem:[#allocation8 + $0x18] sm:$0xff]   ;;  %v1142_v22 = vld [vmem:[#allocation8 + $0x20] sm:$0xff]   ;;  %v1143_v23 = vld [vmem:[#allocation8 + $0x28] sm:$0xff]  }
  0x85   :  { %990 = vmatprep.subr.bf16.mxu0 %v1389_v0  ;;  %1010 = vmatprep.subr.bf16.mxu1 %v1389_v0  ;;  %v877_v24 = vld [vmem:[%s1706_s2] ss:$0 sm:$0xff]  ;;  %v1144_v34 = vld [vmem:[#allocation8 + $0x30] sm:$0xff]   ;;  %v1146_v36 = vld [vmem:[#allocation10] sm:$0xff]  }
  0x86   :  { %v1145_v35 = vld [vmem:[#allocation8 + $0x38] sm:$0xff]   ;;  %v1147_v37 = vld [vmem:[#allocation10 + $0x8] sm:$0xff]   ;;  %v1148_v38 = vld [vmem:[#allocation10 + $0x10] sm:$0xff]  }
  0x87   :  { %v1149_v39 = vld [vmem:[#allocation10 + $0x18] sm:$0xff]   ;;  %v1150_v40 = vld [vmem:[#allocation10 + $0x20] sm:$0xff]   ;;  %v1151_v41 = vld [vmem:[#allocation10 + $0x28] sm:$0xff]  }
  0x88   :  { %991 = vmatpush3.bf16.msra.mxu0 %v1123_v3  ;;  %1011 = vmatpush3.bf16.msra.mxu1 %v1132_v8  ;;  %v887_v42 = vld [vmem:[%s1708_s4] ss:$0 sm:$0xff]  ;;  %v1152_v52 = vld [vmem:[#allocation10 + $0x30] sm:$0xff]   ;;  %v1154_v54 = vld [vmem:[#allocation11] sm:$0xff]  }
  0x89   :  { %992 = vmatprep.subr.bf16.mxu0 %v1389_v0  ;;  %1012 = vmatprep.subr.bf16.mxu1 %v1389_v0  ;;  %v1153_v53 = vld [vmem:[#allocation10 + $0x38] sm:$0xff]   ;;  %v1155_v55 = vld [vmem:[#allocation11 + $0x8] sm:$0xff]   ;;  %v1156_v56 = vld [vmem:[#allocation11 + $0x10] sm:$0xff]  }
  0x8a   :  { %v1157_v57 = vld [vmem:[#allocation11 + $0x18] sm:$0xff]   ;;  %v1158_v58 = vld [vmem:[#allocation11 + $0x20] sm:$0xff]   ;;  %v1159_v59 = vld [vmem:[#allocation11 + $0x28] sm:$0xff]  }
  0x8b   :  { %v896_v60 = vld [vmem:[%s1710_s6] ss:$0 sm:$0xff]  ;;  %v1163_v8 = vld [vmem:[#allocation13 + $0x8] sm:$0xff]  }
  0x8c   :  { %993 = vmatpush3.bf16.msra.mxu0 %v1124_v5  ;;  %1013 = vmatpush3.bf16.msra.mxu1 %v1133_v10  ;;  %v1160_v5 = vld [vmem:[#allocation11 + $0x30] sm:$0xff]   ;;  %v1161_v6 = vld [vmem:[#allocation11 + $0x38] sm:$0xff]  }
  0x8d   :  { %994 = vmatprep.subr.bf16.mxu0 %v1389_v0  ;;  %1014 = vmatprep.subr.bf16.mxu1 %v1389_v0  ;;  %v1165_v10 = vld [vmem:[#allocation13 + $0x18] sm:$0xff]  }
  0x90   :  { %995 = vmatpush3.bf16.msra.mxu0 %v1125_v7  ;;  %1015 = vmatpush3.bf16.msra.mxu1 %v1134_v12  ;;  %v1162_v7 = vld [vmem:[#allocation13] sm:$0xff]   ;;  %v1167_v12 = vld [vmem:[#allocation13 + $0x28] sm:$0xff]  }
  0x91   :  { %996 = vmatprep.subr.bf16.mxu0 %v1389_v0  ;;  %1016 = vmatprep.subr.bf16.mxu1 %v1389_v0 }
  0x94   :  { %997 = vmatpush3.bf16.msra.mxu0 %v1126_v9  ;;  %1017 = vmatpush3.bf16.msra.mxu1 %v1135_v14  ;;  %v1164_v9 = vld [vmem:[#allocation13 + $0x10] sm:$0xff]  }
  0x95   :  { %998 = vmatprep.subr.bf16.mxu0 %v1389_v0  ;;  %1018 = vmatprep.subr.bf16.mxu1 %v1389_v0 }
  0x98   :  { %999 = vmatpush3.bf16.msra.mxu0 %v1127_v11  ;;  %1019 = vmatpush3.bf16.msra.mxu1 %v1136_v16  ;;  %v1166_v11 = vld [vmem:[#allocation13 + $0x20] sm:$0xff]  }
  0x99   :  { %1000 = vmatprep.subr.bf16.mxu0 %v1389_v0  ;;  %1020 = vmatprep.subr.bf16.mxu1 %v1389_v0 }
  0x9c   :  { %1001 = vmatpush3.bf16.msra.mxu0 %v1128_v13  ;;  %1021 = vmatpush3.bf16.msra.mxu1 %v1137_v17  ;;  %v905_v13 = vld [vmem:[%s1712_s8] ss:$0 sm:$0xff]  ;;  %s1391_s8 = smov [#allocation15]  }
  0x9d   :  { %1026 = vmatprep.subr.bf16.mxu0 %v1389_v0  ;;  %1046 = vmatprep.subr.bf16.mxu1 %v1389_v0  ;;  %s858_s16 = sshll.u32 %s1391_s8, 4  ;;  %s859_s16 = int_to_ptr.vmem [resolvable:$true] %s858_s16 }
  0x9e   :  { %s1324_s22 = scalar_lea.vmem %s859_s16, 256  ;;  %p1329_p1 = scmp.lt.s32.totalorder %s859_s16, %s859_s16 }
  0x9f   :  { %1003 = vmatmul.mubr.bf16.vlgmr.msra.gmra.mrb[0].mxu0 %v1129_v15  ;;  %p1325_p0 = scmp.ne.s32.totalorder %s859_s16, %s1324_s22  ;;  %p1330_p2 = scmp.lt.s32.totalorder %s1324_s22, %s1324_s22 }
  0xa0   :  { %1042 = vmatprep.mubr.msk.bf16.mxu0 %vm1390_vm0, %v1389_v0  ;;  %1027 = vmatpush3.bf16.msra.mxu0 %v1138_v18 }
  0xa1   :  { %1028 = vmatprep.subr.bf16.mxu0 %v1389_v0  ;;  %p1331_p3 = por %p1330_p2, %p1329_p1 }
  0xa3   :  { %p1332_p4 = pnand %p1331_p3, %p1325_p0 }
  0xa4   :  { %1029 = vmatpush3.bf16.msra.mxu0 %v1139_v19 }
  0xa5   :  { %1030 = vmatprep.subr.bf16.mxu0 %v1389_v0 }
  0xa8   :  { %1031 = vmatpush3.bf16.msra.mxu0 %v1140_v20 }
  0xa9   :  { %1032 = vmatprep.subr.bf16.mxu0 %v1389_v0 }
  0xac   :  { %1033 = vmatpush3.bf16.msra.mxu0 %v1141_v21 }
  0xad   :  { %1034 = vmatprep.subr.bf16.mxu0 %v1389_v0 }
  0xb0   :  { %1035 = vmatpush3.bf16.msra.mxu0 %v1142_v22 }
  0xb1   :  { %1036 = vmatprep.subr.bf16.mxu0 %v1389_v0 }
  0xb4   :  { %1037 = vmatpush3.bf16.msra.mxu0 %v1143_v23  ;;  %v1168_v23 = vld [vmem:[#allocation13 + $0x30] sm:$0xff]  }
  0xb5   :  { %1038 = vmatprep.subr.bf16.mxu0 %v1389_v0 }
  0xb8   :  { %1039 = vmatpush3.bf16.msra.mxu0 %v1144_v34 }
  0xb9   :  { %1040 = vmatprep.subr.bf16.mxu0 %v1389_v0 }
  0xbc   :  { %1041 = vmatpush3.bf16.msra.mxu0 %v1145_v35 }
  0xbd   :  { %1066 = vmatprep.subr.bf16.mxu0 %v1389_v0 }
 0x172   :  { %v257_v25 = vpop.f32.mrb[0].mxu0 }
 0x173   :  { %v258_v26 = vadd.f32 %v877_v24, %v257_v25  ;;  %v1004_v27 = vpop.f32.mrb[1].mxu0  ;;  %v914_v25 = vld [vmem:[%s1714_s10] ss:$0 sm:$0xff] }
 0x174   :  { %v260_v28 = vpop.f32.mrb[2].mxu0 }
 0x175   :  { %v261_v29 = vadd.f32 %v877_v24, %v260_v28  ;;  %v1005_v30 = vpop.f32.mrb[3].mxu0  ;;  %v264_v31 = vmax.f32 %v258_v26, 0.0  ;;  %v1169_v24 = vld [vmem:[#allocation13 + $0x38] sm:$0xff]  }
 0x177   :  { %v265_v32 = vmax.f32 %v261_v29, 0.0 }
 0x179   :  { %v266_v33 = vpack.c.bf16 %v265_v32, %v264_v31 }
 0x17b   :  { %1023 = vmatmul.mubr.bf16.vlgmr.msra.gmra.mrb[0].mxu1 %v266_v33 }
 0x17c   :  { %1062 = vmatprep.mubr.msk.bf16.mxu1 %vm1390_vm0, %v1389_v0  ;;  %1047 = vmatpush3.bf16.msra.mxu1 %v1146_v36 }
 0x17d   :  { %1048 = vmatprep.subr.bf16.mxu1 %v1389_v0 }
 0x180   :  { %1049 = vmatpush3.bf16.msra.mxu1 %v1147_v37 }
 0x181   :  { %1050 = vmatprep.subr.bf16.mxu1 %v1389_v0 }
 0x184   :  { %1051 = vmatpush3.bf16.msra.mxu1 %v1148_v38 }
 0x185   :  { %1052 = vmatprep.subr.bf16.mxu1 %v1389_v0 }
 0x188   :  { %1053 = vmatpush3.bf16.msra.mxu1 %v1149_v39 }
 0x189   :  { %1054 = vmatprep.subr.bf16.mxu1 %v1389_v0 }
 0x18c   :  { %1055 = vmatpush3.bf16.msra.mxu1 %v1150_v40 }
 0x18d   :  { %1056 = vmatprep.subr.bf16.mxu1 %v1389_v0 }
 0x190   :  { %1057 = vmatpush3.bf16.msra.mxu1 %v1151_v41 }
 0x191   :  { %1058 = vmatprep.subr.bf16.mxu1 %v1389_v0 }
 0x194   :  { %1059 = vmatpush3.bf16.msra.mxu1 %v1152_v52 }
 0x195   :  { %1060 = vmatprep.subr.bf16.mxu1 %v1389_v0 }
 0x198   :  { %1061 = vmatpush3.bf16.msra.mxu1 %v1153_v53 }
 0x199   :  { %1086 = vmatprep.subr.bf16.mxu1 %v1389_v0 }
 0x24e   :  { %v372_v43 = vpop.f32.mrb[0].mxu1 }
 0x24f   :  { %v373_v44 = vadd.f32 %v887_v42, %v372_v43  ;;  %v1024_v45 = vpop.f32.mrb[1].mxu1 }
 0x250   :  { %v375_v46 = vpop.f32.mrb[2].mxu1 }
 0x251   :  { %v376_v47 = vadd.f32 %v887_v42, %v375_v46  ;;  %v1025_v48 = vpop.f32.mrb[3].mxu1  ;;  %v379_v49 = vmax.f32 %v373_v44, 0.0 }
 0x253   :  { %v380_v50 = vmax.f32 %v376_v47, 0.0 }
 0x255   :  { %v381_v51 = vpack.c.bf16 %v380_v50, %v379_v49 }
 0x257   :  { %1043 = vmatmul.mubr.bf16.vlgmr.msra.gmra.mrb[4].mxu0 %v381_v51 }
 0x258   :  { %1082 = vmatprep.mubr.msk.bf16.mxu0 %vm1390_vm0, %v1389_v0  ;;  %1067 = vmatpush3.bf16.msra.mxu0 %v1154_v54 }
 0x259   :  { %1068 = vmatprep.subr.bf16.mxu0 %v1389_v0 }
 0x25c   :  { %1069 = vmatpush3.bf16.msra.mxu0 %v1155_v55 }
 0x25d   :  { %1070 = vmatprep.subr.bf16.mxu0 %v1389_v0 }
 0x260   :  { %1071 = vmatpush3.bf16.msra.mxu0 %v1156_v56 }
 0x261   :  { %1072 = vmatprep.subr.bf16.mxu0 %v1389_v0 }
 0x264   :  { %1073 = vmatpush3.bf16.msra.mxu0 %v1157_v57 }
 0x265   :  { %1074 = vmatprep.subr.bf16.mxu0 %v1389_v0 }
 0x268   :  { %1075 = vmatpush3.bf16.msra.mxu0 %v1158_v58 }
 0x269   :  { %1076 = vmatprep.subr.bf16.mxu0 %v1389_v0 }
 0x26c   :  { %1077 = vmatpush3.bf16.msra.mxu0 %v1159_v59 }
 0x26d   :  { %1078 = vmatprep.subr.bf16.mxu0 %v1389_v0 }
 0x270   :  { %1079 = vmatpush3.bf16.msra.mxu0 %v1160_v5 }
 0x271   :  { %1080 = vmatprep.subr.bf16.mxu0 %v1389_v0 }
 0x274   :  { %1081 = vmatpush3.bf16.msra.mxu0 %v1161_v6 }
 0x32a   :  { %v487_v61 = vpop.f32.mrb[4].mxu0 }
 0x32b   :  { %v488_v62 = vadd.f32 %v896_v60, %v487_v61  ;;  %v1044_v63 = vpop.f32.mrb[5].mxu0 }
 0x32c   :  { %v490_v1 = vpop.f32.mrb[6].mxu0 }
 0x32d   :  { %837 = vst [vmem:[#allocation15] sm:$0xff] %v488_v62  ;;  %v491_v2 = vadd.f32 %v896_v60, %v490_v1  ;;  %v1045_v3 = vpop.f32.mrb[7].mxu0 }
 0x32f   :  { %v494_v4 = vpack.c.bf16 %v491_v2, %v488_v62  ;;  %838 = vst [vmem:[#allocation15 + $0x8] sm:$0xff] %v491_v2 }
 0x331   :  { %1063 = vmatmul.mubr.bf16.vlgmr.msra.gmra.mrb[4].mxu1 %v494_v4 }
 0x332   :  { %1102 = vmatprep.mubr.msk.bf16.mxu1 %vm1390_vm0, %v1389_v0  ;;  %1087 = vmatpush3.bf16.msra.mxu1 %v1162_v7 }
 0x333   :  { %1088 = vmatprep.subr.bf16.mxu1 %v1389_v0 }
 0x336   :  { %1089 = vmatpush3.bf16.msra.mxu1 %v1163_v8 }
 0x337   :  { %1090 = vmatprep.subr.bf16.mxu1 %v1389_v0 }
 0x33a   :  { %1091 = vmatpush3.bf16.msra.mxu1 %v1164_v9 }
 0x33b   :  { %1092 = vmatprep.subr.bf16.mxu1 %v1389_v0 }
 0x33e   :  { %1093 = vmatpush3.bf16.msra.mxu1 %v1165_v10 }
 0x33f   :  { %1094 = vmatprep.subr.bf16.mxu1 %v1389_v0 }
 0x342   :  { %1095 = vmatpush3.bf16.msra.mxu1 %v1166_v11 }
 0x343   :  { %1096 = vmatprep.subr.bf16.mxu1 %v1389_v0 }
 0x346   :  { %1097 = vmatpush3.bf16.msra.mxu1 %v1167_v12 }
 0x347   :  { %1098 = vmatprep.subr.bf16.mxu1 %v1389_v0 }
 0x34a   :  { %1099 = vmatpush3.bf16.msra.mxu1 %v1168_v23 }
 0x34b   :  { %1100 = vmatprep.subr.bf16.mxu1 %v1389_v0 }
 0x34e   :  { %1101 = vmatpush3.bf16.msra.mxu1 %v1169_v24 }
 0x404   :  { %v600_v14 = vpop.f32.mrb[4].mxu1 }
 0x405   :  { %v601_v15 = vadd.f32 %v905_v13, %v600_v14  ;;  %v1064_v16 = vpop.f32.mrb[5].mxu1 }
 0x406   :  { %v603_v17 = vpop.f32.mrb[6].mxu1 }
 0x407   :  { %v604_v18 = vadd.f32 %v905_v13, %v603_v17  ;;  %v1065_v19 = vpop.f32.mrb[7].mxu1  ;;  %v607_v20 = vmax.f32 %v601_v15, 0.0 }
 0x409   :  { %v608_v21 = vmax.f32 %v604_v18, 0.0 }
 0x40b   :  { %v609_v22 = vpack.c.bf16 %v608_v21, %v607_v20 }
 0x40d   :  { %1083 = vmatmul.mubr.bf16.vlgmr.msra.gmra.mrb[8].mxu0 %v609_v22 }
 0x4e0   :  { %v715_v26 = vpop.f32.mrb[8].mxu0 }
 0x4e1   :  { %v716_v27 = vadd.f32 %v914_v25, %v715_v26  ;;  %v1084_v28 = vpop.f32.mrb[9].mxu0 }
 0x4e2   :  { %v718_v29 = vpop.f32.mrb[10].mxu0 }
 0x4e3   :  { %v719_v30 = vadd.f32 %v914_v25, %v718_v29  ;;  %v1085_v31 = vpop.f32.mrb[11].mxu0  ;;  %v722_v32 = vmax.f32 %v716_v27, 0.0 }
 0x4e5   :  { %v723_v33 = vmax.f32 %v719_v30, 0.0 }
 0x4e7   :  { %v724_v34 = vpack.c.bf16 %v723_v33, %v722_v32 }
 0x4e9   :  { %1103 = vmatmul.mubr.bf16.vlgmr.msra.gmra.mrb[8].mxu1 %v724_v34 }
 0x4ea   :  { %1335 = shalt.err (!%p1332_p4)
}
 0x4eb   :  { %s1336_s20 = scalar_lea.hbm %s1718_s14, 256 }
 0x4ec   :  { %p1337_p5 = scmp.ne.s32.totalorder %s1718_s14, %s1336_s20  ;;  %p1340_p6 = scmp.lt.u32.totalorder %s1336_s20, %s1718_s14 }
 0x4ee   :  { %p1342_p7 = pnand %p1340_p6, %p1337_p5 }
 0x4f0   :  { %1345 = shalt.err (!%p1342_p7)
}
 0x4f1   :  { %s1392_s29 = smov 128   ;;  %s1393_s0 = smov 8   ;;  %v923_v0 = vld [vmem:[%s1716_s12] ss:$0 sm:$0xff] }
 0x4f2   :  { %864 = dma.vmem_to_hbm [thread:$0]  %s859_s16, 256, %s1718_s14, [#allocation16], %s1392_s29, %s1392_s29, %s1393_s0  }
 0x4f3   :  { %s1394_s7 = smov [#allocation14]  }
 0x4f4   :  { %s846_s5 = sshll.u32 %s1394_s7, 4  ;;  %s847_s5 = int_to_ptr.vmem [resolvable:$true] %s846_s5 }
 0x4f5   :  { %s1346_s11 = scalar_lea.vmem %s847_s5, 256  ;;  %p1351_p9 = scmp.lt.s32.totalorder %s847_s5, %s847_s5 }
 0x4f6   :  { %p1347_p8 = scmp.ne.s32.totalorder %s847_s5, %s1346_s11  ;;  %p1352_p10 = scmp.lt.s32.totalorder %s1346_s11, %s1346_s11 }
 0x4f8   :  { %p1353_p11 = por %p1352_p10, %p1351_p9 }
 0x4fa   :  { %p1354_p12 = pnand %p1353_p11, %p1347_p8 }
 0x5bc   :  { %v830_v35 = vpop.f32.mrb[8].mxu1 }
 0x5bd   :  { %v831_v36 = vadd.f32 %v923_v0, %v830_v35  ;;  %v1104_v37 = vpop.f32.mrb[9].mxu1 }
 0x5be   :  { %v833_v38 = vpop.f32.mrb[10].mxu1 }
 0x5bf   :  { %839 = vst [vmem:[#allocation14] sm:$0xff] %v831_v36  ;;  %v834_v39 = vadd.f32 %v923_v0, %v833_v38  ;;  %v1105_v40 = vpop.f32.mrb[11].mxu1 }
 0x5c1   :  { %840 = vst [vmem:[#allocation14 + $0x8] sm:$0xff] %v834_v39 }
 0x5c2   :  { %1357 = shalt.err (!%p1354_p12)
}
 0x5c3   :  { %s1358_s25 = scalar_lea.hbm %s1717_s13, 256 }
 0x5c4   :  { %p1359_p13 = scmp.ne.s32.totalorder %s1717_s13, %s1358_s25  ;;  %p1362_p0 = scmp.lt.u32.totalorder %s1358_s25, %s1717_s13 }
 0x5c6   :  { %p1364_p1 = pnand %p1362_p0, %p1359_p13 }
 0x5c8   :  { %1367 = shalt.err (!%p1364_p1)
}
 0x5c9   :  { %852 = dma.vmem_to_hbm [thread:$0]  %s847_s5, 256, %s1717_s13, [#allocation4], %s1392_s29, %s1392_s29, %s1393_s0  }
 0x5ca   :  { %1376 = dma.done.wait [#allocation4], 256  }
 0x5cb   :  { %1377 = vsyncadd [#allocation4], 4294967040 }
 0x5cc   :  { %1378 = dma.done.wait [#allocation16], 256  }
 0x5cd   :  { %1379 = vsyncadd [#allocation16], 4294967040 }
 0x5ce   :  { %871 = vsyncpa [#allocation3], 1 }
 0x5cf   :  { %872 = vsyncpa [#allocation6], 1 }
 0x5d0   :  { %873 = vsyncpa [#allocation9], 1 }
 0x5d1   :  { %874 = vsyncpa [#allocation12], 1 }
 0x5d2   :  { %875 = vsyncpa [#allocation4], 1 }
 0x5d3   :  { %876 = vsyncpa [#allocation16], 1 }

</bundles_post_ra>
